<compile_context>
chip_gen: v7x
topology: tpu7x:2x2x1
jax: 0.10.0
libtpu: 0.0.40
codegen_flags: <defaults>
</compile_context>

<pallas_src>
import functools

import jax
import jax.numpy as jnp
from jax.experimental import pallas as pl
from jax.experimental.pallas import tpu as pltpu

IGNORE_INDEX = 255
_MAX_LANE_TILE = 4096


def _ceil_to(x, m):
    return ((x + m - 1) // m) * m


def _pick_lane_tile(n, max_tile=_MAX_LANE_TILE):
    """Largest multiple of 128 <= max_tile that divides n (n is a multiple of 128)."""
    t = min(max_tile, n)
    t -= t % 128
    while n % t:
        t -= 128
    return t


# ----------------------------------------------------------------------------
# Pallas kernel 1: per-pixel NLL over channel-major blocks of the native layout
# ----------------------------------------------------------------------------
def _nll_kernel(logits_ref, tgt_ref, nll_ref, *, ignore_index):
    x = logits_ref[0].astype(jnp.float32)                   # (C, T)
    t = tgt_ref[0]                                          # (1, T) int32

    m = jnp.max(x, axis=0, keepdims=True)                   # (1, T)
    lse = jnp.log(jnp.sum(jnp.exp(x - m), axis=0, keepdims=True)) + m

    valid = t != ignore_index
    t_safe = jnp.where(valid, t, 0)
    cidx = jax.lax.broadcasted_iota(jnp.int32, x.shape, 0)  # (C, T)
    sel = jnp.sum(jnp.where(cidx == t_safe, x, 0.0), axis=0, keepdims=True)

    nll_ref[0] = lse - sel                                  # (1, T) f32


def nll_per_pixel(pred_nchw, target_nhw, ignore_index):
    """Per-pixel cross-entropy nll in one Pallas pass over (B, C, H*W) logits.

    Returns (nll_flat, tgt_flat), both of length B*HWp where HWp is H*W padded
    up to a multiple of 128 (padded pixels carry target == ignore_index)."""
    b, c, h, w = pred_nchw.shape
    hw = h * w
    hwp = max(_ceil_to(hw, 128), 128)

    logits = pred_nchw.reshape(b, c, hw)                    # view, no transpose copy
    tgt = target_nhw.reshape(b, 1, hw).astype(jnp.int32)
    if hwp != hw:
        # TODO(synk): this pad is an extra HBM copy; only hit when H*W % 128 != 0.
        logits = jnp.pad(logits, ((0, 0), (0, 0), (0, hwp - hw)))
        tgt = jnp.pad(tgt, ((0, 0), (0, 0), (0, hwp - hw)),
                      constant_values=ignore_index)

    tile = _pick_lane_tile(hwp)
    grid = (b, hwp // tile)

    nll = pl.pallas_call(
        functools.partial(_nll_kernel, ignore_index=ignore_index),
        out_shape=jax.ShapeDtypeStruct((b, 1, hwp), jnp.float32),
        grid=grid,
        in_specs=[
            pl.BlockSpec((1, c, tile), lambda i, j: (i, 0, j)),
            pl.BlockSpec((1, 1, tile), lambda i, j: (i, 0, j)),
        ],
        out_specs=pl.BlockSpec((1, 1, tile), lambda i, j: (i, 0, j)),
        compiler_params=pltpu.CompilerParams(
            dimension_semantics=("parallel", "parallel")),
    )(logits, tgt)

    return nll.reshape(-1), tgt.reshape(-1)


# ----------------------------------------------------------------------------
# Pallas kernel 2: masked sum (f32) + exact count (int32) reduction
# ----------------------------------------------------------------------------
def _masked_sum_kernel(v_ref, m_ref, sum_ref, cnt_ref, acc_s, acc_c):
    @pl.when(pl.program_id(0) == 0)
    def _():
        acc_s[...] = jnp.zeros_like(acc_s)
        acc_c[...] = jnp.zeros_like(acc_c)

    m = m_ref[...]                                          # (R, 1024) int32 {0,1}
    acc_s[...] += jnp.sum(v_ref[...] * m.astype(jnp.float32))
    acc_c[...] += jnp.sum(m)

    @pl.when(pl.program_id(0) == pl.num_programs(0) - 1)
    def _():
        sum_ref[...] = acc_s[...]
        cnt_ref[...] = acc_c[...]


def masked_sum_count(values_flat, mask_flat_i32):
    """sum(values * mask) as f32 and sum(mask) as exact int32, via a Pallas
    reduction over sublane/lane-dense (rows, 1024) slabs."""
    lane = 1024
    n = values_flat.shape[0]
    n_pad = max(_ceil_to(n, 8 * lane), 8 * lane)
    if n_pad != n:
        values_flat = jnp.pad(values_flat, (0, n_pad - n))
        mask_flat_i32 = jnp.pad(mask_flat_i32, (0, n_pad - n))
    rows = n_pad // lane                                    # multiple of 8
    v2 = values_flat.reshape(rows, lane)
    m2 = mask_flat_i32.reshape(rows, lane)

    br = min(rows, 64)
    br -= br % 8
    while rows % br:
        br -= 8
    nblk = rows // br

    # TODO(synk): on v7x a leading size-2 "parallel" split with per-core partial
    # sums would use both TensorCores here; the heavy nll kernel above already
    # has fully parallel grid axes, so this light reduction stays single-stream.
    s, cnt = pl.pallas_call(
        _masked_sum_kernel,
        out_shape=(jax.ShapeDtypeStruct((1, 1), jnp.float32),
                   jax.ShapeDtypeStruct((1, 1), jnp.int32)),
        grid=(nblk,),
        in_specs=[pl.BlockSpec((br, lane), lambda i: (i, 0)),
                  pl.BlockSpec((br, lane), lambda i: (i, 0))],
        out_specs=(pl.BlockSpec((1, 1), lambda i: (0, 0)),
                   pl.BlockSpec((1, 1), lambda i: (0, 0))),
        scratch_shapes=[pltpu.VMEM((1, 1), jnp.float32),
                        pltpu.VMEM((1, 1), jnp.int32)],
        compiler_params=pltpu.CompilerParams(
            dimension_semantics=("arbitrary",)),
    )(v2, m2)
    return s[0, 0], cnt[0, 0]


# ----------------------------------------------------------------------------
# OHEM cross entropy (OhemCrossEntropy2dTensor.forward), fully on-device
# ----------------------------------------------------------------------------
def ohem_cross_entropy(pred, target, ignore_index=IGNORE_INDEX,
                       thresh=0.7, min_kept=10000):
    b, c, h, w = pred.shape
    n_real = b * h * w

    nll, tgt_flat = nll_per_pixel(pred, target, ignore_index)     # (B*HWp,)
    valid = tgt_flat != ignore_index
    num_valid = jnp.sum(valid.astype(jnp.int32))

    if min_kept > 0:
        # gt-class softmax prob; invalid pixels filled with 1.0 (as in torch).
        mask_prob = jnp.where(valid, jnp.exp(-nll), jnp.float32(1.0))
        k = min(n_real, int(min_kept)) - 1
        tval = jnp.sort(mask_prob)[k]
        threshold = jnp.where(tval > thresh, tval, jnp.float32(thresh))
        kept = mask_prob <= threshold
        # OHEM mining applies only when min_kept <= num_valid and num_valid > 0.
        # TODO(synk): the reference's `print('Labels: ...')` logging on the
        # inactive branch is skipped to keep the forward traceable.
        apply_ohem = jnp.logical_and(num_valid >= min_kept, num_valid > 0)
        final_valid = jnp.where(apply_ohem, jnp.logical_and(valid, kept), valid)
    else:
        final_valid = valid

    loss_sum, cnt = masked_sum_count(nll, final_valid.astype(jnp.int32))
    cnt_f = jnp.maximum(cnt.astype(jnp.float32), 1.0)
    return jnp.where(cnt > 0, loss_sum / cnt_f, jnp.float32(0.0))


# ----------------------------------------------------------------------------
# Module wrappers
# ----------------------------------------------------------------------------
class OhemCrossEntropy2dTensor:
    """Ohem Cross Entropy, tensor version (Pallas/JAX)."""

    def __init__(self, ignore_index=255, thresh=0.7, min_kept=10000,
                 use_weight=False):
        self.ignore_index = ignore_index
        self.thresh = float(thresh)
        self.min_kept = int(min_kept)
        if use_weight:
            # TODO(synk): per-class CE weights (use_weight=True) are not used by
            # OhemWithAux and are not implemented in the Pallas path.
            raise NotImplementedError("use_weight=True is not supported")

    def __call__(self, pred, target):
        return ohem_cross_entropy(pred, target, self.ignore_index,
                                  self.thresh, self.min_kept)

    forward = __call__


class OhemWithAux:
    def __init__(self, ignore_index=255, thresh=0.7, min_kept=10000,
                 aux_weight=0.4):
        self.ignore_index = ignore_index
        self.thresh = float(thresh)
        self.min_kept = int(min_kept)
        self.aux_weight = aux_weight
        self.main_loss = OhemCrossEntropy2dTensor(ignore_index, thresh, min_kept)
        self.aux_loss = OhemCrossEntropy2dTensor(ignore_index, thresh, min_kept)

    def __call__(self, pred, target):
        x_main, x_aux = pred
        return (self.main_loss(x_main, target)
                + self.aux_weight * self.aux_loss(x_aux, target))

    forward = __call__


# ----------------------------------------------------------------------------
# Demo / self-check
# ----------------------------------------------------------------------------
def _ref_masked_ce_mean(pred, target, ignore_index):
    b, c, h, w = pred.shape
    logits = jnp.transpose(pred, (0, 2, 3, 1)).reshape(-1, c).astype(jnp.float32)
    t = target.reshape(-1).astype(jnp.int32)
    valid = t != ignore_index
    t_safe = jnp.where(valid, t, 0)
    logp = jax.nn.log_softmax(logits, axis=-1)
    nll = -jnp.take_along_axis(logp, t_safe[:, None], axis=-1)[:, 0]
    return jnp.sum(jnp.where(valid, nll, 0.0)) / jnp.sum(valid)


if __name__ == "__main__":
    B, C, H, W = 2, 4, 16, 16
    key = jax.random.PRNGKey(0)
    k1, k2, k3, k4 = jax.random.split(key, 4)

    x_main = jax.random.normal(k1, (B, C, H, W), dtype=jnp.float32)
    x_aux = jax.random.normal(k2, (B, C, H, W), dtype=jnp.float32)
    labels = jax.random.randint(k3, (B, H, W), 0, C)
    ignore = jax.random.uniform(k4, (B, H, W)) < 0.1
    target = jnp.where(ignore, IGNORE_INDEX, labels).astype(jnp.int32)

    loss_fn = OhemWithAux(ignore_index=IGNORE_INDEX, thresh=0.7,
                          min_kept=10000, aux_weight=0.4)
    loss = jax.jit(loss_fn.forward)((x_main, x_aux), target)
    loss = jax.block_until_ready(loss)

    # Pure-JAX reference: at this scale min_kept > num_valid, so OHEM mining is
    # inactive and the loss is the plain masked CE mean, main + 0.4 * aux.
    ref = (_ref_masked_ce_mean(x_main, target, IGNORE_INDEX)
           + 0.4 * _ref_masked_ce_mean(x_aux, target, IGNORE_INDEX))

    ok = bool(jnp.isfinite(loss)) and bool(jnp.abs(loss - ref) < 1e-4)
    if ok:
        print("KERNEL_OK")
    else:
        print("MISMATCH", float(loss), float(ref))
</pallas_src>

<mosaic_0001>
module attributes {stable_mosaic.version = 11 : i64} {
  func.func @_nll_kernel(%arg0: i32, %arg1: i32, %arg2: memref<1x4x256xf32, #tpu.memory_space<vmem>>, %arg3: memref<1x1x256xi32, #tpu.memory_space<vmem>>, %arg4: memref<1x1x256xf32, #tpu.memory_space<vmem>>) attributes {dimension_semantics = [#tpu.dimension_semantics<parallel>, #tpu.dimension_semantics<parallel>], iteration_bounds = array<i64: 2, 1>, scalar_prefetch = 0 : i64, scratch_operands = 0 : i64, tpu.core_type = #tpu.core_type<tc>, window_params = [{transform_indices = @transform_0, window_bounds = array<i64: 1, 4, 256>}, {transform_indices = @transform_1, window_bounds = array<i64: 1, 1, 256>}, {transform_indices = @transform_2, window_bounds = array<i64: 1, 1, 256>}]} {
    %c0 = arith.constant 0 : index
    %c0_0 = arith.constant 0 : index
    %c0_1 = arith.constant 0 : index
    %0 = vector.load %arg2[%c0, %c0_0, %c0_1] : memref<1x4x256xf32, #tpu.memory_space<vmem>>, vector<1x4x256xf32>
    %1 = vector.shape_cast %0 : vector<1x4x256xf32> to vector<4x256xf32>
    %c0_2 = arith.constant 0 : index
    %c0_3 = arith.constant 0 : index
    %c0_4 = arith.constant 0 : index
    %2 = vector.load %arg3[%c0_2, %c0_3, %c0_4] : memref<1x1x256xi32, #tpu.memory_space<vmem>>, vector<1x1x256xi32>
    %3 = vector.shape_cast %2 : vector<1x1x256xi32> to vector<1x256xi32>
    %cst = arith.constant dense<0xFF800000> : vector<256xf32>
    %4 = vector.multi_reduction <maximumf>, %1, %cst [0] : vector<4x256xf32> to vector<256xf32>
    %5 = vector.shape_cast %4 : vector<256xf32> to vector<1x256xf32>
    %6 = vector.broadcast %5 : vector<1x256xf32> to vector<4x256xf32>
    %7 = arith.subf %1, %6 : vector<4x256xf32>
    %8 = math.exp %7 : vector<4x256xf32>
    %cst_5 = arith.constant dense<0.000000e+00> : vector<256xf32>
    %9 = vector.multi_reduction <add>, %8, %cst_5 [0] : vector<4x256xf32> to vector<256xf32>
    %10 = vector.shape_cast %9 : vector<256xf32> to vector<1x256xf32>
    %11 = math.log %10 : vector<1x256xf32>
    %12 = arith.addf %11, %5 : vector<1x256xf32>
    %c255_i32 = arith.constant 255 : i32
    %13 = vector.broadcast %c255_i32 : i32 to vector<1x256xi32>
    %14 = arith.cmpi ne, %3, %13 : vector<1x256xi32>
    %c0_i32 = arith.constant 0 : i32
    %15 = vector.broadcast %c0_i32 : i32 to vector<1x256xi32>
    %16 = arith.select %14, %3, %15 : vector<1x256xi1>, vector<1x256xi32>
    %17 = tpu.iota {dimensions = array<i32: 0>} : vector<4x256xi32>
    %18 = vector.broadcast %16 : vector<1x256xi32> to vector<4x256xi32>
    %19 = arith.cmpi eq, %17, %18 : vector<4x256xi32>
    %cst_6 = arith.constant 0.000000e+00 : f32
    %20 = vector.broadcast %cst_6 : f32 to vector<4x256xf32>
    %21 = arith.select %19, %1, %20 : vector<4x256xi1>, vector<4x256xf32>
    %cst_7 = arith.constant dense<0.000000e+00> : vector<256xf32>
    %22 = vector.multi_reduction <add>, %21, %cst_7 [0] : vector<4x256xf32> to vector<256xf32>
    %23 = vector.shape_cast %22 : vector<256xf32> to vector<1x256xf32>
    %24 = arith.subf %12, %23 : vector<1x256xf32>
    %c0_8 = arith.constant 0 : index
    %c0_9 = arith.constant 0 : index
    %c0_10 = arith.constant 0 : index
    %25 = vector.load %arg4[%c0_8, %c0_9, %c0_10] : memref<1x1x256xf32, #tpu.memory_space<vmem>>, vector<1x1x256xf32>
    %26 = vector.shape_cast %25 : vector<1x1x256xf32> to vector<1x256xf32>
    %27 = vector.shape_cast %24 : vector<1x256xf32> to vector<1x1x256xf32>
    tpu.vector_store %arg4[%c0_8, %c0_9, %c0_10], %27 {strides = array<i32>} : memref<1x1x256xf32, #tpu.memory_space<vmem>>, vector<1x1x256xf32>,
    return
  }
  func.func @transform_0(%arg0: i32, %arg1: i32) -> (i32, i32, i32) {
    %c0_i32 = arith.constant 0 : i32
    %c0_i32_0 = arith.constant 0 : i32
    return %arg0, %c0_i32, %arg1 : i32, i32, i32
  }
  func.func @transform_1(%arg0: i32, %arg1: i32) -> (i32, i32, i32) {
    %c0_i32 = arith.constant 0 : i32
    %c0_i32_0 = arith.constant 0 : i32
    return %arg0, %c0_i32, %arg1 : i32, i32, i32
  }
  func.func @transform_2(%arg0: i32, %arg1: i32) -> (i32, i32, i32) {
    %c0_i32 = arith.constant 0 : i32
    %c0_i32_0 = arith.constant 0 : i32
    return %arg0, %c0_i32, %arg1 : i32, i32, i32
  }
}

module attributes {stable_mosaic.version = 11 : i64} {
  func.func @_masked_sum_kernel(%arg0: i32, %arg1: memref<8x1024xf32, #tpu.memory_space<vmem>>, %arg2: memref<8x1024xi32, #tpu.memory_space<vmem>>, %arg3: memref<1x1xf32, #tpu.memory_space<vmem>>, %arg4: memref<1x1xi32, #tpu.memory_space<vmem>>, %arg5: memref<1x1xf32, #tpu.memory_space<vmem>>, %arg6: memref<1x1xi32, #tpu.memory_space<vmem>>) attributes {dimension_semantics = [#tpu.dimension_semantics<arbitrary>], iteration_bounds = array<i64: 1>, scalar_prefetch = 0 : i64, scratch_operands = 2 : i64, tpu.core_type = #tpu.core_type<tc>, window_params = [{transform_indices = @transform_0, window_bounds = array<i64: 8, 1024>}, {transform_indices = @transform_1, window_bounds = array<i64: 8, 1024>}, {pipeline_mode = #tpu.pipeline_mode<synchronous>, transform_indices = @transform_2, window_bounds = array<i64: 1, 1>}, {pipeline_mode = #tpu.pipeline_mode<synchronous>, transform_indices = @transform_3, window_bounds = array<i64: 1, 1>}]} {
    %c0_i32 = arith.constant 0 : i32
    %0 = arith.cmpi eq, %arg0, %c0_i32 : i32
    %1 = arith.extui %0 : i1 to i32
    %c0_i32_0 = arith.constant 0 : i32
    %2 = arith.cmpi ne, %1, %c0_i32_0 : i32
    scf.if %2 {
      %cst_15 = arith.constant 0.000000e+00 : f32
      %26 = vector.broadcast %cst_15 : f32 to vector<1x1xf32>
      %c0_16 = arith.constant 0 : index
      %c0_17 = arith.constant 0 : index
      %27 = vector.load %arg5[%c0_16, %c0_17] : memref<1x1xf32, #tpu.memory_space<vmem>>, vector<1x1xf32>
      tpu.vector_store %arg5[%c0_16, %c0_17], %26 {strides = array<i32>} : memref<1x1xf32, #tpu.memory_space<vmem>>, vector<1x1xf32>,
      %c0_i32_18 = arith.constant 0 : i32
      %28 = vector.broadcast %c0_i32_18 : i32 to vector<1x1xi32>
      %c0_19 = arith.constant 0 : index
      %c0_20 = arith.constant 0 : index
      %29 = vector.load %arg6[%c0_19, %c0_20] : memref<1x1xi32, #tpu.memory_space<vmem>>, vector<1x1xi32>
      tpu.vector_store %arg6[%c0_19, %c0_20], %28 {strides = array<i32>} : memref<1x1xi32, #tpu.memory_space<vmem>>, vector<1x1xi32>,
    } else {
    }
    %c0 = arith.constant 0 : index
    %c0_1 = arith.constant 0 : index
    %3 = vector.load %arg2[%c0, %c0_1] : memref<8x1024xi32, #tpu.memory_space<vmem>>, vector<8x1024xi32>
    %c0_2 = arith.constant 0 : index
    %c0_3 = arith.constant 0 : index
    %4 = vector.load %arg5[%c0_2, %c0_3] : memref<1x1xf32, #tpu.memory_space<vmem>>, vector<1x1xf32>
    %c0_4 = arith.constant 0 : index
    %c0_5 = arith.constant 0 : index
    %5 = vector.load %arg1[%c0_4, %c0_5] : memref<8x1024xf32, #tpu.memory_space<vmem>>, vector<8x1024xf32>
    %6 = arith.sitofp %3 : vector<8x1024xi32> to vector<8x1024xf32>
    %7 = arith.mulf %5, %6 : vector<8x1024xf32>
    %8 = vector.shape_cast %7 : vector<8x1024xf32> to vector<1x8x1024xf32>
    %cst = arith.constant dense<0.000000e+00> : vector<1xf32>
    %9 = vector.multi_reduction <add>, %8, %cst [1, 2] : vector<1x8x1024xf32> to vector<1xf32>
    %10 = vector.shape_cast %9 : vector<1xf32> to vector<1x1x1xf32>
    %11 = vector.extract %10[0, 0, 0] : f32 from vector<1x1x1xf32>
    %12 = vector.broadcast %11 : f32 to vector<1x1xf32>
    %13 = arith.addf %4, %12 : vector<1x1xf32>
    %c0_6 = arith.constant 0 : index
    %c0_7 = arith.constant 0 : index
    %14 = vector.load %arg5[%c0_6, %c0_7] : memref<1x1xf32, #tpu.memory_space<vmem>>, vector<1x1xf32>
    tpu.vector_store %arg5[%c0_6, %c0_7], %13 {strides = array<i32>} : memref<1x1xf32, #tpu.memory_space<vmem>>, vector<1x1xf32>,
    %c0_8 = arith.constant 0 : index
    %c0_9 = arith.constant 0 : index
    %15 = vector.load %arg6[%c0_8, %c0_9] : memref<1x1xi32, #tpu.memory_space<vmem>>, vector<1x1xi32>
    %16 = vector.shape_cast %3 : vector<8x1024xi32> to vector<1x8x1024xi32>
    %cst_10 = arith.constant dense<0> : vector<1xi32>
    %17 = vector.multi_reduction <add>, %16, %cst_10 [1, 2] : vector<1x8x1024xi32> to vector<1xi32>
    %18 = vector.shape_cast %17 : vector<1xi32> to vector<1x1x1xi32>
    %19 = vector.extract %18[0, 0, 0] : i32 from vector<1x1x1xi32>
    %20 = vector.broadcast %19 : i32 to vector<1x1xi32>
    %21 = arith.addi %15, %20 : vector<1x1xi32>
    %c0_11 = arith.constant 0 : index
    %c0_12 = arith.constant 0 : index
    %22 = vector.load %arg6[%c0_11, %c0_12] : memref<1x1xi32, #tpu.memory_space<vmem>>, vector<1x1xi32>
    tpu.vector_store %arg6[%c0_11, %c0_12], %21 {strides = array<i32>} : memref<1x1xi32, #tpu.memory_space<vmem>>, vector<1x1xi32>,
    %c0_i32_13 = arith.constant 0 : i32
    %23 = arith.cmpi eq, %arg0, %c0_i32_13 : i32
    %24 = arith.extui %23 : i1 to i32
    %c0_i32_14 = arith.constant 0 : i32
    %25 = arith.cmpi ne, %24, %c0_i32_14 : i32
    scf.if %25 {
      %c0_15 = arith.constant 0 : index
      %c0_16 = arith.constant 0 : index
      %26 = vector.load %arg5[%c0_15, %c0_16] : memref<1x1xf32, #tpu.memory_space<vmem>>, vector<1x1xf32>
      %c0_17 = arith.constant 0 : index
      %c0_18 = arith.constant 0 : index
      %27 = vector.load %arg3[%c0_17, %c0_18] : memref<1x1xf32, #tpu.memory_space<vmem>>, vector<1x1xf32>
      tpu.vector_store %arg3[%c0_17, %c0_18], %26 {strides = array<i32>} : memref<1x1xf32, #tpu.memory_space<vmem>>, vector<1x1xf32>,
      %c0_19 = arith.constant 0 : index
      %c0_20 = arith.constant 0 : index
      %28 = vector.load %arg6[%c0_19, %c0_20] : memref<1x1xi32, #tpu.memory_space<vmem>>, vector<1x1xi32>
      %c0_21 = arith.constant 0 : index
      %c0_22 = arith.constant 0 : index
      %29 = vector.load %arg4[%c0_21, %c0_22] : memref<1x1xi32, #tpu.memory_space<vmem>>, vector<1x1xi32>
      tpu.vector_store %arg4[%c0_21, %c0_22], %28 {strides = array<i32>} : memref<1x1xi32, #tpu.memory_space<vmem>>, vector<1x1xi32>,
    } else {
    }
    return
  }
  func.func @transform_0(%arg0: i32) -> (i32, i32) {
    %c0_i32 = arith.constant 0 : i32
    %c0_i32_0 = arith.constant 0 : i32
    return %arg0, %c0_i32 : i32, i32
  }
  func.func @transform_1(%arg0: i32) -> (i32, i32) {
    %c0_i32 = arith.constant 0 : i32
    %c0_i32_0 = arith.constant 0 : i32
    return %arg0, %c0_i32 : i32, i32
  }
  func.func @transform_2(%arg0: i32) -> (i32, i32) {
    %c0_i32 = arith.constant 0 : i32
    %c0_i32_0 = arith.constant 0 : i32
    %c0_i32_1 = arith.constant 0 : i32
    return %c0_i32, %c0_i32_0 : i32, i32
  }
  func.func @transform_3(%arg0: i32) -> (i32, i32) {
    %c0_i32 = arith.constant 0 : i32
    %c0_i32_0 = arith.constant 0 : i32
    %c0_i32_1 = arith.constant 0 : i32
    return %c0_i32, %c0_i32_0 : i32, i32
  }
}

</mosaic_0001>

<bundles_post_ra>
// kernel: a_call__.4
= control target key start
LH: loop header
LB: loop body
LE: loop exit
PB: predicated region body
PF: predicated region fallthrough
CT: control target
= control target key end

     0   :  { %s499_s9 = smov 0   ;;  %s501_s10 = smov 0   ;;  %s551_s0 = inlined_call_operand.vmem [shape: f32[2,4,256], index: 0, kind: input, shape index: {}]   ;;  %s552_s1 = inlined_call_operand.vmem [shape: s32[2,1,256], index: 1, kind: input, shape index: {}]   ;;  %s553_s2 = inlined_call_operand.vmem [shape: f32[2,1,256], index: 2, kind: output, shape index: {}]  }
   0x1   :  { %s503_s11 = smov 0  }
   0x2 LB: > { %s24_s12 = sadd.s32 1, %s477_s10  ;;  %p419_p0 = scmp.ge.s32.totalorder %s481_s11, 1  ;;  %s481_s11 = sphi %s503_s11, %s12_s11   ;;  %s477_s10 = sphi %s501_s10, %s555_s10   ;;  %s473_s9 = sphi %s499_s9, %s554_s9  }
   0x3   : > { %p26_p1 = scmp.ge.s32.totalorder %s24_s12, 2  ;;  %p149_p2 = scmp.lt.s32.totalorder %s481_s11, 3 }
   0x5   : > { %s557_s12 = smov (%p26_p1, %s24_s12), 0  ;;  %p150_p3 = pnand %p419_p0, %p149_p2 }
   0x6   : > { %p187_p4 = scmp.lt.s32.totalorder (!%p150_p3), %s473_s9, 1  ;;  %vm219_vm0 = vcmask (!%p150_p3), 1043456   ;;  %v266_v15 = vlaneseq (!%p150_p3)  ;;  %v483_v57 = vmov (!%p150_p3), 1966171168  }
   0x7   : > { %153 = sbr.rel (%p150_p3) target bundleno = 89 (0x59), region = 28  ;;  %v300_v58 = vunpack.c.l.s4 (!%p150_p3), %v483_v57 }
   0x8   : > { %v267_v19 = vshrl.u32 (!%p150_p3), %v266_v15, 7  ;;  %vm316_vm4 = vcmp.lt.s32.totalorder (!%p150_p3), %v266_v15, 256 }
   0xa   : > { %v270_v22 = vsub.s32 (!%p150_p3), 0, %v267_v19  ;;  %v274_v24 = vsub.s32 (!%p150_p3), 1, %v267_v19 }
   0xe   : > { %s559_s9 = smov (!%p187_p4, %s473_s9), 1 }
   0xf   : > { %s426_s13 = sshll.u32 %s559_s9, 3  ;;  %s422_s17 = sshll.u32 %s559_s9, 1 }
  0x10   : > { %s194_s16 = scalar_lea.vmem %s551_s0, %s426_s13  ;;  %s203_s20 = scalar_lea.vmem %s552_s1, %s422_s17 }
  0x11   : > { %v214_v0 = vld [vmem:[%s194_s16] sm:$0xff]  ;;  %s212_s23 = scalar_lea.vmem %s553_s2, %s422_s17 }
  0x12   : > { %v217_v1 = vcombine.high %v214_v0, %v214_v0  ;;  %v220_v2 = vsel %vm219_vm0, %v214_v0, -inf  ;;  %v215_v17 = vld [vmem:[%s203_s20] sm:$0x3] }
  0x13   : > { %v221_v3 = vrot.slane %v220_v2, 4  ;;  %vm264_vm1 = vcmp.ne.s32.totalorder %v215_v17, 255 }
  0x14   : > { %v227_v4 = vsel %vm219_vm0, %v217_v1, -inf  ;;  %v265_v23 = vsel %vm264_vm1, %v215_v17, 0 }
  0x15   : > { %v222_v5 = vmax.f32 %v220_v2, %v221_v3  ;;  %v228_v6 = vrot.slane %v227_v4, 4  ;;  %v271_v25 = vrot.slane %v265_v23, %v270_v22  ;;  %v275_v26 = vrot.slane %v265_v23, %v274_v24 }
  0x16   : > { %v301_v2 = vunpack.c.0.s8 %v300_v58 }
  0x17   : > { %v223_v7 = vrot.slane %v222_v5, 2  ;;  %v229_v8 = vmax.f32 %v227_v4, %v228_v6  ;;  %vm276_vm2 = vcmp.eq.s32.totalorder %v267_v19, %v271_v25  ;;  %vm277_vm3 = vcmp.eq.s32.totalorder %v267_v19, %v275_v26 }
  0x18   : > { %v278_v27 = vsel %vm276_vm2, %v214_v0, 0.0  ;;  %v279_v31 = vsel %vm277_vm3, %v217_v1, 0.0  ;;  %v304_v6 = vsub.s32 %v301_v2, %v267_v19 }
  0x19   : > { %v224_v9 = vmax.f32 %v222_v5, %v223_v7  ;;  %v230_v10 = vrot.slane %v229_v8, 2  ;;  %v280_v33 = vsel %vm219_vm0, %v278_v27, 0.0  ;;  %v287_v37 = vsel %vm219_vm0, %v279_v31, 0.0 }
  0x1a   : > { %v281_v38 = vrot.slane %v280_v33, 4  ;;  %v288_v41 = vrot.slane %v287_v37, 4 }
  0x1b   : > { %v225_v11 = vrot.slane %v224_v9, 1  ;;  %v231_v12 = vmax.f32 %v229_v8, %v230_v10 }
  0x1c   : > { %v282_v44 = vadd.f32 %v281_v38, %v280_v33  ;;  %v289_v47 = vadd.f32 %v288_v41, %v287_v37 }
  0x1d   : > { %v226_v13 = vmax.f32 %v224_v9, %v225_v11  ;;  %v232_v14 = vrot.slane %v231_v12, 1 }
  0x1e   : > { %v283_v50 = vrot.slane %v282_v44, 2  ;;  %v290_v52 = vrot.slane %v289_v47, 2 }
  0x1f   : > { %v233_v16 = vmax.f32 %v231_v12, %v232_v14 }
  0x20   : > { %v284_v53 = vadd.f32 %v283_v50, %v282_v44  ;;  %v291_v54 = vadd.f32 %v290_v52, %v289_v47 }
  0x21   : > { %v236_v18 = vcombine.low %v226_v13, %v233_v16 }
  0x22   : > { %v285_v55 = vrot.slane %v284_v53, 1  ;;  %v292_v56 = vrot.slane %v291_v54, 1 }
  0x23   : > { %v238_v20 = vsub.f32 %v214_v0, %v236_v18 }
  0x24   : > { %v286_v61 = vadd.f32 %v285_v55, %v284_v53  ;;  %v293_v1 = vadd.f32 %v292_v56, %v291_v54 }
  0x25   : > { %v239_v21 = vmul.f32 1.442695, %v238_v20 }
  0x27   : > { %453 = vpow2.f32 %v239_v21 }
  0x31   : > { %v454_v28 = vpop.eup %453 }
  0x32   : > { %v242_v29 = vcombine.high %v454_v28, %v454_v28  ;;  %v244_v30 = vsel %vm219_vm0, %v454_v28, 0.0 }
  0x33   : > { %v245_v32 = vrot.slane %v244_v30, 4 }
  0x34   : > { %v251_v34 = vsel %vm219_vm0, %v242_v29, 0.0 }
  0x35   : > { %v246_v35 = vadd.f32 %v245_v32, %v244_v30  ;;  %v252_v36 = vrot.slane %v251_v34, 4 }
  0x37   : > { %v247_v39 = vrot.slane %v246_v35, 2  ;;  %v253_v40 = vadd.f32 %v252_v36, %v251_v34 }
  0x39   : > { %v248_v42 = vadd.f32 %v247_v39, %v246_v35  ;;  %v254_v43 = vrot.slane %v253_v40, 2 }
  0x3b   : > { %v249_v45 = vrot.slane %v248_v42, 1  ;;  %v255_v46 = vadd.f32 %v254_v43, %v253_v40 }
  0x3d   : > { %v250_v48 = vadd.f32 %v249_v45, %v248_v42  ;;  %v256_v49 = vrot.slane %v255_v46, 1 }
  0x3f   : > { %v257_v51 = vadd.f32 %v256_v49, %v255_v46  ;;  %455 = vlog2.f32 %v250_v48 }
  0x41   : > { %457 = vlog2.f32 %v257_v51 }
  0x49   : > { %v456_v59 = vpop.eup %455 }
  0x4a   : > { %v259_v60 = vmul.f32 0.6931472, %v456_v59 }
  0x4b   : > { %v458_v62 = vpop.eup %457 }
  0x4c   : > { %v261_v63 = vmul.f32 0.6931472, %v458_v62  ;;  %v262_v0 = vadd.f32 %v259_v60, %v226_v13 }
  0x4e   : > { %v263_v3 = vadd.f32 %v261_v63, %v233_v16  ;;  %v294_v4 = vsub.f32 %v262_v0, %v286_v61 }
  0x50   : > { %v295_v5 = vsub.f32 %v263_v3, %v293_v1 }
  0x52   : > { %v298_v7 = vcombine.low %v294_v4, %v295_v5 }
  0x54   : > { %v305_v8 = vrot.slane %v298_v7, %v304_v6 }
  0x56   : > { %v312_v9 = vrot.slane %v305_v8, %v304_v6 }
  0x58   : > { %318 = vst.msk [vmem:[%s212_s23] sm:$0x3] %vm316_vm4, %v312_v9 }
  0x59 PF: > { %s12_s11 = sadd.s32 1, %s481_s11   ;;  %s554_s9 = smov %s477_s10 }
  0x5a   : > { %p9_p5 = scmp.ge.s32.totalorder %s12_s11, 4   ;;  %s555_s10 = smov %s557_s12 }
  0x5c   :  { %11 = sbr.rel (!%p9_p5) target bundleno = 2 (0x2), region = 61 }

// kernel: a_call__.7
= control target key start
LH: loop header
LB: loop body
LE: loop exit
PB: predicated region body
PF: predicated region fallthrough
CT: control target
= control target key end

     0   :  { %9 = vsyncpa [#allocation5], 0  ;;  %s306_s0 = inlined_call_operand.vmem [shape: f32[8,1024], index: 0, kind: input, shape index: {}]   ;;  %s307_s1 = inlined_call_operand.vmem [shape: s32[8,1024], index: 1, kind: input, shape index: {}]   ;;  %s308_s2 = inlined_call_operand.hbm [shape: f32[1,1], index: 2, kind: output, shape index: {0}]   ;;  %s309_s3 = inlined_call_operand.hbm [shape: s32[1,1], index: 3, kind: output, shape index: {1}]  }
   0x1   :  { %v22_v0 = vld [vmem:[%s307_s1] sm:$0xff]  ;;  %v23_v1 = vld [vmem:[%s307_s1 + $0x8] sm:$0xff]  ;;  %v24_v2 = vld [vmem:[%s307_s1 + $0x10] sm:$0xff] }
   0x2   :  { %v25_v3 = vld [vmem:[%s307_s1 + $0x18] sm:$0xff]  ;;  %v26_v4 = vld [vmem:[%s307_s1 + $0x20] sm:$0xff]  ;;  %v27_v5 = vld [vmem:[%s307_s1 + $0x28] sm:$0xff]  ;;  %v40_v6 = vcvt.s32.f32 %v23_v1  ;;  %v41_v7 = vcvt.s32.f32 %v24_v2  ;;  %v39_v8 = vcvt.s32.f32 %v22_v0 }
   0x3   :  { %v28_v9 = vld [vmem:[%s307_s1 + $0x30] sm:$0xff]  ;;  %v29_v10 = vld [vmem:[%s307_s1 + $0x38] sm:$0xff]  ;;  %v31_v11 = vld [vmem:[%s306_s0] sm:$0xff]  ;;  %v42_v12 = vcvt.s32.f32 %v25_v3  ;;  %v76_v13 = vadd.s32 %v26_v4, %v22_v0  ;;  %v77_v14 = vadd.s32 %v27_v5, %v23_v1  ;;  %v43_v21 = vcvt.s32.f32 %v26_v4 }
   0x4   :  { %v32_v15 = vld [vmem:[%s306_s0 + $0x8] sm:$0xff]  ;;  %v33_v16 = vld [vmem:[%s306_s0 + $0x10] sm:$0xff]  ;;  %v78_v17 = vadd.s32 %v28_v9, %v24_v2  ;;  %v79_v18 = vadd.s32 %v29_v10, %v25_v3  ;;  %v47_v19 = vmul.f32 %v39_v8, %v31_v11  ;;  %v34_v20 = vld [vmem:[%s306_s0 + $0x18] sm:$0xff] }
   0x5   :  { %v48_v22 = vmul.f32 %v40_v6, %v32_v15  ;;  %v49_v23 = vmul.f32 %v41_v7, %v33_v16  ;;  %v80_v24 = vadd.s32 %v77_v14, %v76_v13  ;;  %v35_v26 = vld [vmem:[%s306_s0 + $0x20] sm:$0xff] }
   0x6   :  { %v81_v25 = vadd.s32 %v79_v18, %v78_v17 }
   0x7   :  { %10 = vsyncpa [#allocation7], 0  ;;  %v44_v27 = vcvt.s32.f32 %v27_v5  ;;  %v50_v28 = vmul.f32 %v42_v12, %v34_v20  ;;  %v55_v29 = vadd.f32 %v48_v22, %v47_v19  ;;  %v36_v31 = vld [vmem:[%s306_s0 + $0x28] sm:$0xff]  ;;  %v45_v32 = vcvt.s32.f32 %v28_v9  ;;  %v37_v37 = vld [vmem:[%s306_s0 + $0x30] sm:$0xff]  ;;  %s198_s17 = smov [#allocation4]   ;;  %s199_s19 = smov [#allocation6]  }
   0x8   :  { %v82_v30 = vadd.s32 %v81_v25, %v80_v24  ;;  %v51_v33 = vmul.f32 %v43_v21, %v35_v26  ;;  %v46_v38 = vcvt.s32.f32 %v29_v10  ;;  %v38_v42 = vld [vmem:[%s306_s0 + $0x38] sm:$0xff]  ;;  %vm19_vm0 = vcmask 0   ;;  %s118_s18 = sshll.u32 %s198_s17, 4  ;;  %s128_s20 = sshll.u32 %s199_s19, 4  ;;  %s119_s18 = int_to_ptr.vmem [resolvable:$true] %s118_s18  ;;  %s272_s20 = int_to_ptr.vmem [resolvable:$true] %s128_s20 }
   0x9   :  { %v56_v34 = vadd.f32 %v55_v29, %v49_v23  ;;  %v52_v39 = vmul.f32 %v44_v27, %v36_v31  ;;  %v53_v43 = vmul.f32 %v45_v32, %v37_v37  ;;  %v196_v50 = vmov 0.0   ;;  %s148_s21 = scalar_lea.vmem %s119_s18, 16  ;;  %s152_s22 = scalar_lea.vmem %s119_s18, 32 }
   0xa   :  { %v84_v35 = vshrl.u32 %v82_v30, 16  ;;  %v83_v36 = vand.u32 65535, %v82_v30  ;;  %v54_v46 = vmul.f32 %v46_v38, %v38_v42  ;;  %20 = vst.msk [vmem:[#allocation2] sm:$0x1] %vm19_vm0, %v196_v50  ;;  %v197_v51 = vmov 0   ;;  %p149_p0 = scmp.ne.s32.totalorder %s119_s18, %s148_s21  ;;  %p153_p1 = scmp.lt.s32.totalorder %s119_s18, %s119_s18 }
   0xb   :  { %v57_v40 = vadd.f32 %v56_v34, %v50_v28  ;;  %21 = vst.msk [vmem:[#allocation3] sm:$0x1] %vm19_vm0, %v197_v51  ;;  %p154_p2 = scmp.lt.s32.totalorder %s152_s22, %s148_s21 }
   0xc   :  { %v86_v41 = vcvt.s32.f32 %v84_v35  ;;  %v85_v45 = vcvt.s32.f32 %v83_v36 }
   0xd   :  { %v58_v44 = vadd.f32 %v57_v40, %v51_v33  ;;  %p155_p3 = por %p154_p2, %p153_p1 }
   0xe   :  { %89 = vadd.xlane.f32.xlu0 %v86_v41 }
   0xf   :  { %v59_v47 = vadd.f32 %v58_v44, %v52_v39  ;;  %p156_p4 = pnand %p155_p3, %p149_p0 }
  0x11   :  { %v60_v48 = vadd.f32 %v59_v47, %v53_v43  ;;  %v30_v7 = vld [vmem:[#allocation2] sm:$0x1] }
  0x12   :  { %87 = vadd.xlane.f32.xlu0 %v85_v45  ;;  %v75_v8 = vld [vmem:[#allocation3] sm:$0x1] }
  0x13   :  { %v61_v49 = vadd.f32 %v60_v48, %v54_v46 }
  0x15   :  { %62 = vadd.xlane.f32.xlu1 %v61_v49 }
  0x9b   :  { %v90_v52 = vpop.xlane.xlu0 %89 }
  0x9c   :  { %v92_v53 = vcvt.f32.s32 %v90_v52 }
  0x9e   :  { %v93_v55 = vshll.u32 %v92_v53, 16 }
  0x9f   :  { %v88_v54 = vpop.xlane.xlu0 %87 }
  0xa0   :  { %v91_v56 = vcvt.f32.s32 %v88_v54 }
  0xa2   :  { %v94_v57 = vadd.s32 %v93_v55, %v91_v56  ;;  %v63_v58 = vpop.xlane.xlu1 %62 }
  0xa3   :  { %v64_v59 = vrot.slane %v63_v58, 4 }
  0xa4   :  { %v95_v60 = vrot.slane %v94_v57, 4 }
  0xa5   :  { %v65_v61 = vadd.f32 %v64_v59, %v63_v58 }
  0xa6   :  { %v96_v62 = vadd.s32 %v95_v60, %v94_v57 }
  0xa7   :  { %v66_v63 = vrot.slane %v65_v61, 2 }
  0xa8   :  { %v97_v0 = vrot.slane %v96_v62, 2 }
  0xa9   :  { %v67_v1 = vadd.f32 %v66_v63, %v65_v61 }
  0xaa   :  { %v98_v2 = vadd.s32 %v97_v0, %v96_v62 }
  0xab   :  { %v68_v3 = vrot.slane %v67_v1, 1 }
  0xac   :  { %v99_v4 = vrot.slane %v98_v2, 1 }
  0xad   :  { %v69_v5 = vadd.f32 %v68_v3, %v67_v1 }
  0xae   :  { %v100_v6 = vadd.s32 %v99_v4, %v98_v2 }
  0xaf   :  { %140 = vpush %v69_v5 }
  0xb0   :  { %142 = vpush %v100_v6 }
  0xe0   :  { %s141_s0 = spop %140 }
  0xe1   :  { %v71_v9 = vstv %s141_s0  ;;  %s143_s16 = spop %142 }
  0xe2   :  { %v72_v10 = vadd.f32 %v71_v9, %v30_v7  ;;  %v102_v11 = vstv %s143_s16 }
  0xe3   :  { %v103_v12 = vadd.s32 %v102_v11, %v75_v8 }
  0xe4   :  { %74 = vst.msk [vmem:[#allocation2] sm:$0x1] %vm19_vm0, %v72_v10 }
  0xe5   :  { %104 = vst.msk [vmem:[#allocation3] sm:$0x1] %vm19_vm0, %v103_v12 }
  0xeb   :  { %v108_v13 = vld [vmem:[#allocation2] sm:$0x1] }
  0xec   :  { %109 = vst.msk [vmem:[#allocation4] sm:$0x1] %vm19_vm0, %v108_v13  ;;  %v110_v14 = vld [vmem:[#allocation3] sm:$0x1] }
  0xed   :  { %159 = shalt.err (!%p156_p4)
}
  0xee   :  { %s160_s25 = scalar_lea.hbm %s308_s2, 16 }
  0xef   :  { %p161_p5 = scmp.ne.s32.totalorder %s308_s2, %s160_s25  ;;  %p164_p6 = scmp.lt.u32.totalorder %s160_s25, %s308_s2 }
  0xf1   :  { %p166_p7 = pnand %p164_p6, %p161_p5 }
  0xf3   :  { %169 = shalt.err (!%p166_p7)
}
  0xf4   :  { %121 = dma.vmem_to_hbm [thread:$0]  %s119_s18, 16, %s308_s2, [#allocation5]   ;;  %111 = vst.msk [vmem:[#allocation6] sm:$0x1] %vm19_vm0, %v110_v14 }
  0xf5   :  { %s170_s5 = scalar_lea.vmem %s272_s20, 16  ;;  %s174_s6 = scalar_lea.vmem %s272_s20, 32 }
  0xf6   :  { %p171_p8 = scmp.ne.s32.totalorder %s272_s20, %s170_s5  ;;  %p175_p9 = scmp.lt.s32.totalorder %s272_s20, %s272_s20 }
  0xf7   :  { %p176_p10 = scmp.lt.s32.totalorder %s174_s6, %s170_s5 }
  0xf9   :  { %p177_p11 = por %p176_p10, %p175_p9 }
  0xfb   :  { %p178_p12 = pnand %p177_p11, %p171_p8 }
  0xfd   :  { %181 = shalt.err (!%p178_p12)
}
  0xfe   :  { %s182_s8 = scalar_lea.hbm %s309_s3, 16 }
  0xff   :  { %p183_p13 = scmp.ne.s32.totalorder %s309_s3, %s182_s8  ;;  %p186_p0 = scmp.lt.u32.totalorder %s182_s8, %s309_s3 }
 0x101   :  { %p188_p1 = pnand %p186_p0, %p183_p13 }
 0x103   :  { %191 = shalt.err (!%p188_p1)
}
 0x104   :  { %131 = dma.vmem_to_hbm [thread:$0]  %s272_s20, 16, %s309_s3, [#allocation7]  }
 0x105   :  { %192 = dma.done.wait [#allocation5], 16  }
 0x106   :  { %193 = vsyncadd [#allocation5], 4294967280 }
 0x107   :  { %194 = dma.done.wait [#allocation7], 16  }
 0x108   :  { %195 = vsyncadd [#allocation7], 4294967280 }
 0x109   :  { %138 = vsyncpa [#allocation5], 1 }
 0x10a   :  { %139 = vsyncpa [#allocation7], 1 }

</bundles_post_ra>
